<compile_context>
chip_gen: v6e
topology: v6e:2x2x1
jax: 0.10.0
libtpu: 0.0.40
codegen_flags: <defaults>
</compile_context>

<pallas_src>
import functools
import numpy as np

import jax
import jax.numpy as jnp
from jax import lax
from jax.experimental import pallas as pl
from jax.experimental.pallas import tpu as pltpu


# ----------------------------------------------------------------------------
# Kernel A: fused Q/K/V projection + rotary rotation (cos/sin vector form).
# One grid step = (batch element, sequence tile).
# ----------------------------------------------------------------------------
def _proj_rope_kernel(x_ref, w_ref, cos_ref, sin_ref, q_ref, k_ref, v_ref, *,
                      compute_dtype):
    x = x_ref[0].astype(compute_dtype)                    # [tm, d]

    def mm(idx):
        # Weights are pre-transposed to [in, out] and pre-cast on the host:
        # no in-kernel transpose or cast; MXU contracts x's last dim directly.
        return jnp.dot(x, w_ref[idx], preferred_element_type=jnp.float32)

    q, q_sw = mm(0), mm(1)    # q, and q with even/odd output columns swapped
    k, k_sw = mm(2), mm(3)
    v = mm(4)

    cos = cos_ref[...]                                    # [tm, d] f32
    sin = sin_ref[...]                                    # [tm, d] f32 (signed)
    q_ref[0] = (q * cos + q_sw * sin).astype(q_ref.dtype)
    k_ref[0] = (k * cos + k_sw * sin).astype(k_ref.dtype)
    v_ref[0] = v.astype(v_ref.dtype)


def _proj_rope(x, w_stack, cos_v, sin_v, *, tm, compute_dtype, store_dtype):
    b, m, d = x.shape
    out_sds = jax.ShapeDtypeStruct((b, m, d), store_dtype)
    kernel = functools.partial(_proj_rope_kernel, compute_dtype=compute_dtype)
    return pl.pallas_call(
        kernel,
        out_shape=(out_sds, out_sds, out_sds),
        grid=(b, m // tm),
        in_specs=[
            pl.BlockSpec((1, tm, d), lambda bi, mi: (bi, mi, 0)),   # x tile
            pl.BlockSpec((5, d, d), lambda bi, mi: (0, 0, 0)),      # weights
            pl.BlockSpec((tm, d), lambda bi, mi: (mi, 0)),          # cos table
            pl.BlockSpec((tm, d), lambda bi, mi: (mi, 0)),          # sin table
        ],
        out_specs=(
            pl.BlockSpec((1, tm, d), lambda bi, mi: (bi, mi, 0)),
            pl.BlockSpec((1, tm, d), lambda bi, mi: (bi, mi, 0)),
            pl.BlockSpec((1, tm, d), lambda bi, mi: (bi, mi, 0)),
        ),
        compiler_params=pltpu.CompilerParams(
            dimension_semantics=("parallel", "parallel"),
            vmem_limit_bytes=48 * 1024 * 1024,
        ),
    )(x, w_stack, cos_v, sin_v)


# ----------------------------------------------------------------------------
# Kernel B: flash-attention style causal attention with online softmax.
# Grid = (batch, q-tile, kv-tile); kv is the innermost ("arbitrary") axis.
# ----------------------------------------------------------------------------
def _flash_attn_kernel(q_ref, k_ref, v_ref, o_ref, m_sc, l_sc, acc_sc, *,
                       scale, tq, tkv, compute_dtype, approx_reciprocal):
    ki = pl.program_id(2)
    q_start = pl.program_id(1) * tq
    k_start = ki * tkv

    @pl.when(ki == 0)
    def _init():
        m_sc[...] = jnp.full_like(m_sc, -jnp.inf)
        l_sc[...] = jnp.zeros_like(l_sc)
        acc_sc[...] = jnp.zeros_like(acc_sc)

    # Skip kv tiles that lie entirely above the causal diagonal (~2x work).
    @pl.when(k_start <= q_start + tq - 1)
    def _compute():
        q = q_ref[0].astype(compute_dtype)                # [tq, d]
        k = k_ref[0].astype(compute_dtype)                # [tkv, d]
        # Contract the feature dims directly: no k transpose is materialized.
        s = lax.dot_general(q, k, (((1,), (1,)), ((), ())),
                            preferred_element_type=jnp.float32) * scale
        row = q_start + lax.broadcasted_iota(jnp.int32, (tq, tkv), 0)
        col = k_start + lax.broadcasted_iota(jnp.int32, (tq, tkv), 1)
        s = jnp.where(col <= row, s, jnp.float32(-1e30))  # mask math stays f32

        m_prev = m_sc[...]
        m_new = jnp.maximum(m_prev, jnp.max(s, axis=-1, keepdims=True))
        alpha = jnp.exp(m_prev - m_new)
        p = jnp.exp(s - m_new)                            # f32
        l_sc[...] = alpha * l_sc[...] + jnp.sum(p, axis=-1, keepdims=True)
        acc_sc[...] = alpha * acc_sc[...] + jnp.dot(
            p.astype(compute_dtype), v_ref[0].astype(compute_dtype),
            preferred_element_type=jnp.float32)
        m_sc[...] = m_new

    @pl.when(ki == pl.num_programs(2) - 1)
    def _finalize():
        inv_l = pl.reciprocal(l_sc[...], approx=approx_reciprocal)
        o_ref[0] = (acc_sc[...] * inv_l).astype(o_ref.dtype)


def _flash_attention(q, k, v, *, scale, tq, tkv, compute_dtype, out_dtype,
                     approx_reciprocal):
    b, m, d = q.shape
    kernel = functools.partial(
        _flash_attn_kernel, scale=scale, tq=tq, tkv=tkv,
        compute_dtype=compute_dtype, approx_reciprocal=approx_reciprocal)
    return pl.pallas_call(
        kernel,
        out_shape=jax.ShapeDtypeStruct((b, m, d), out_dtype),
        grid=(b, m // tq, m // tkv),
        in_specs=[
            pl.BlockSpec((1, tq, d), lambda bi, qi, ki: (bi, qi, 0)),
            pl.BlockSpec((1, tkv, d), lambda bi, qi, ki: (bi, ki, 0)),
            pl.BlockSpec((1, tkv, d), lambda bi, qi, ki: (bi, ki, 0)),
        ],
        out_specs=pl.BlockSpec((1, tq, d), lambda bi, qi, ki: (bi, qi, 0)),
        scratch_shapes=[
            pltpu.VMEM((tq, 1), jnp.float32),   # running max  m_i
            pltpu.VMEM((tq, 1), jnp.float32),   # running sum  l_i
            pltpu.VMEM((tq, d), jnp.float32),   # output accumulator
        ],
        compiler_params=pltpu.CompilerParams(
            dimension_semantics=("parallel", "parallel", "arbitrary"),
            vmem_limit_bytes=48 * 1024 * 1024,
        ),
    )(q, k, v)


# ----------------------------------------------------------------------------
# Top-level wrapper.
# ----------------------------------------------------------------------------
def _pick_tile(n, cap):
    """Largest tile <= cap that is a multiple of 8 and divides n (else n)."""
    if n <= cap:
        return n
    t = cap - (cap % 8)
    while t >= 8:
        if n % t == 0:
            return t
        t -= 8
    return n


def rope_masked_attention_head(x, w_q, w_k, w_v, *, context_window=None,
                               compute_dtype=jnp.bfloat16,
                               approx_reciprocal=True,
                               tile_m=512, tile_q=256, tile_kv=256):
    """x: [b, m, d]; w_*: [d, d] stored PyTorch-style as [out, in]."""
    b, m, d = x.shape
    assert d % 2 == 0, "d_model must be even for rotary embeddings"
    if context_window is not None:
        assert m <= context_window

    # ---- Host-side preprocessing (layout plumbing only) --------------------
    # Pre-transposed weights [in, out] plus copies with even/odd output
    # columns swapped:  (x @ W_sw)[:, e] == (x @ W)[:, e ^ 1], which lets the
    # kernel apply the rotary rotation with two lane-aligned multiplies.
    perm = np.arange(d) ^ 1
    w_q_t = jnp.asarray(w_q, jnp.float32).T
    w_k_t = jnp.asarray(w_k, jnp.float32).T
    w_v_t = jnp.asarray(w_v, jnp.float32).T
    w_stack = jnp.stack(
        [w_q_t, w_q_t[:, perm], w_k_t, w_k_t[:, perm], w_v_t],
        axis=0).astype(compute_dtype)

    # cos / signed-sin tables: the only non-zero entries of the module's r,
    # faithful to its `i - 1` exponent quirk.  ~m*d floats instead of m*d*d.
    pos = np.arange(m, dtype=np.float64)
    half = np.arange(d // 2, dtype=np.float64)
    phi = 10000.0 ** (-2.0 * (half - 1.0) / d)
    ang = pos[:, None] * phi[None, :]                     # [m, d//2]
    cos_v = np.zeros((m, d), np.float32)
    sin_v = np.zeros((m, d), np.float32)
    cos_v[:, 0::2] = np.cos(ang)
    cos_v[:, 1::2] = np.cos(ang)
    sin_v[:, 0::2] = np.sin(ang)       # multiplies q[2i+1] for output 2i
    sin_v[:, 1::2] = -np.sin(ang)      # multiplies q[2i]   for output 2i+1
    cos_v = jnp.asarray(cos_v)
    sin_v = jnp.asarray(sin_v)

    tm = _pick_tile(m, tile_m)
    tq = _pick_tile(m, tile_q)
    tkv = _pick_tile(m, tile_kv)

    q_rot, k_rot, v = _proj_rope(x, w_stack, cos_v, sin_v, tm=tm,
                                 compute_dtype=compute_dtype,
                                 store_dtype=compute_dtype)

    return _flash_attention(q_rot, k_rot, v,
                            scale=float(1.0 / np.sqrt(d)),
                            tq=tq, tkv=tkv,
                            compute_dtype=compute_dtype,
                            out_dtype=x.dtype,
                            approx_reciprocal=approx_reciprocal)


# ----------------------------------------------------------------------------
# Parameter / rotary construction and pure-JAX reference (for checking).
# ----------------------------------------------------------------------------
def rotary_embeddings(context_window, d):
    # Faithful reproduction of the module's loop (including the `i - 1` quirk).
    r = np.zeros((context_window, d, d), dtype=np.float32)
    for pos in range(context_window):
        for i in range(d // 2):
            phi = 10000 ** (-2 * (i - 1) / d)
            m_phi = pos * phi
            r[pos, 2 * i, 2 * i] = np.cos(m_phi)
            r[pos, 2 * i, 2 * i + 1] = -np.sin(m_phi)
            r[pos, 2 * i + 1, 2 * i] = np.sin(m_phi)
            r[pos, 2 * i + 1, 2 * i + 1] = np.cos(m_phi)
    return jnp.asarray(r)


def init_linear_weight(key, d):
    # PyTorch nn.Linear default: U(-1/sqrt(in), 1/sqrt(in)), shape [out, in].
    bound = 1.0 / np.sqrt(d)
    return jax.random.uniform(key, (d, d), jnp.float32, -bound, bound)


def reference(x, w_q, w_k, w_v, r):
    b, m, d = x.shape
    q = x @ w_q.T
    k = x @ w_k.T
    v = x @ w_v.T
    q_rot = jnp.einsum("bmd,mde->bme", q, r[:m])
    k_rot = jnp.einsum("bmd,mde->bme", k, r[:m])
    scores = jnp.einsum("bqd,bkd->bqk", q_rot, k_rot) / np.sqrt(d)
    mask = np.tril(np.ones((m, m), dtype=bool))
    scores = jnp.where(mask[None], scores, -jnp.inf)
    p = jax.nn.softmax(scores, axis=-1)
    return jnp.einsum("bqk,bkd->bqd", p, v)


if __name__ == "__main__":
    config = {"d_model": 32, "context_window": 16}
    batch, seq = 2, 8

    key = jax.random.PRNGKey(0)
    kx, kq, kk, kv = jax.random.split(key, 4)

    x = jax.random.normal(kx, (batch, seq, config["d_model"]), jnp.float32)
    w_q = init_linear_weight(kq, config["d_model"])
    w_k = init_linear_weight(kk, config["d_model"])
    w_v = init_linear_weight(kv, config["d_model"])
    r = rotary_embeddings(config["context_window"], config["d_model"])

    ref = jax.block_until_ready(reference(x, w_q, w_k, w_v, r))

    # Exact (f32 MXU feed) path: tight tolerance against the reference.
    out_f32 = rope_masked_attention_head(
        x, w_q, w_k, w_v, context_window=config["context_window"],
        compute_dtype=jnp.float32, approx_reciprocal=False)
    out_f32 = jax.block_until_ready(out_f32)
    np.testing.assert_allclose(np.asarray(out_f32), np.asarray(ref),
                               rtol=1e-4, atol=1e-4)

    # Throughput (bf16 MXU feed + EUP approx reciprocal) path: bf16 tolerance.
    out_bf16 = rope_masked_attention_head(
        x, w_q, w_k, w_v, context_window=config["context_window"],
        compute_dtype=jnp.bfloat16, approx_reciprocal=True)
    out_bf16 = jax.block_until_ready(out_bf16)
    np.testing.assert_allclose(np.asarray(out_bf16), np.asarray(ref),
                               rtol=5e-2, atol=5e-2)

    print("KERNEL_OK")
</pallas_src>

<mosaic_0001>
module attributes {stable_mosaic.version = 11 : i64} {
  func.func @_proj_rope_kernel(%arg0: i32, %arg1: i32, %arg2: memref<1x8x32xf32, #tpu.memory_space<vmem>>, %arg3: memref<5x32x32xf32, #tpu.memory_space<vmem>>, %arg4: memref<8x32xf32, #tpu.memory_space<vmem>>, %arg5: memref<8x32xf32, #tpu.memory_space<vmem>>, %arg6: memref<1x8x32xf32, #tpu.memory_space<vmem>>, %arg7: memref<1x8x32xf32, #tpu.memory_space<vmem>>, %arg8: memref<1x8x32xf32, #tpu.memory_space<vmem>>) attributes {dimension_semantics = [#tpu.dimension_semantics<parallel>, #tpu.dimension_semantics<parallel>], iteration_bounds = array<i64: 2, 1>, scalar_prefetch = 0 : i64, scratch_operands = 0 : i64, tpu.core_type = #tpu.core_type<tc>, window_params = [{transform_indices = @transform_0, window_bounds = array<i64: 1, 8, 32>}, {pipeline_mode = #tpu.pipeline_mode<synchronous>, transform_indices = @transform_1, window_bounds = array<i64: 5, 32, 32>}, {transform_indices = @transform_2, window_bounds = array<i64: 8, 32>}, {transform_indices = @transform_3, window_bounds = array<i64: 8, 32>}, {transform_indices = @transform_4, window_bounds = array<i64: 1, 8, 32>}, {transform_indices = @transform_5, window_bounds = array<i64: 1, 8, 32>}, {transform_indices = @transform_6, window_bounds = array<i64: 1, 8, 32>}]} {
    %c0 = arith.constant 0 : index
    %c0_0 = arith.constant 0 : index
    %c0_1 = arith.constant 0 : index
    %0 = vector.load %arg2[%c0, %c0_0, %c0_1] : memref<1x8x32xf32, #tpu.memory_space<vmem>>, vector<1x8x32xf32>
    %1 = vector.shape_cast %0 : vector<1x8x32xf32> to vector<8x32xf32>
    %c0_2 = arith.constant 0 : index
    %c0_3 = arith.constant 0 : index
    %c0_4 = arith.constant 0 : index
    %2 = vector.load %arg3[%c0_2, %c0_3, %c0_4] : memref<5x32x32xf32, #tpu.memory_space<vmem>>, vector<1x32x32xf32>
    %3 = vector.shape_cast %2 : vector<1x32x32xf32> to vector<32x32xf32>
    %cst = arith.constant dense<0.000000e+00> : vector<8x32xf32>
    %4 = tpu.matmul %1, %3, %cst {dimension_numbers = #tpu.dot_dimension_numbers<[1], [0], [0], [1], [0, 0, 1, 1], [], []>} : vector<8x32xf32>, vector<32x32xf32>, vector<8x32xf32> -> vector<8x32xf32>
    %c1 = arith.constant 1 : index
    %c0_5 = arith.constant 0 : index
    %c0_6 = arith.constant 0 : index
    %5 = vector.load %arg3[%c1, %c0_5, %c0_6] : memref<5x32x32xf32, #tpu.memory_space<vmem>>, vector<1x32x32xf32>
    %6 = vector.shape_cast %5 : vector<1x32x32xf32> to vector<32x32xf32>
    %cst_7 = arith.constant dense<0.000000e+00> : vector<8x32xf32>
    %7 = tpu.matmul %1, %6, %cst_7 {dimension_numbers = #tpu.dot_dimension_numbers<[1], [0], [0], [1], [0, 0, 1, 1], [], []>} : vector<8x32xf32>, vector<32x32xf32>, vector<8x32xf32> -> vector<8x32xf32>
    %c2 = arith.constant 2 : index
    %c0_8 = arith.constant 0 : index
    %c0_9 = arith.constant 0 : index
    %8 = vector.load %arg3[%c2, %c0_8, %c0_9] : memref<5x32x32xf32, #tpu.memory_space<vmem>>, vector<1x32x32xf32>
    %9 = vector.shape_cast %8 : vector<1x32x32xf32> to vector<32x32xf32>
    %cst_10 = arith.constant dense<0.000000e+00> : vector<8x32xf32>
    %10 = tpu.matmul %1, %9, %cst_10 {dimension_numbers = #tpu.dot_dimension_numbers<[1], [0], [0], [1], [0, 0, 1, 1], [], []>} : vector<8x32xf32>, vector<32x32xf32>, vector<8x32xf32> -> vector<8x32xf32>
    %c3 = arith.constant 3 : index
    %c0_11 = arith.constant 0 : index
    %c0_12 = arith.constant 0 : index
    %11 = vector.load %arg3[%c3, %c0_11, %c0_12] : memref<5x32x32xf32, #tpu.memory_space<vmem>>, vector<1x32x32xf32>
    %12 = vector.shape_cast %11 : vector<1x32x32xf32> to vector<32x32xf32>
    %cst_13 = arith.constant dense<0.000000e+00> : vector<8x32xf32>
    %13 = tpu.matmul %1, %12, %cst_13 {dimension_numbers = #tpu.dot_dimension_numbers<[1], [0], [0], [1], [0, 0, 1, 1], [], []>} : vector<8x32xf32>, vector<32x32xf32>, vector<8x32xf32> -> vector<8x32xf32>
    %c4 = arith.constant 4 : index
    %c0_14 = arith.constant 0 : index
    %c0_15 = arith.constant 0 : index
    %14 = vector.load %arg3[%c4, %c0_14, %c0_15] : memref<5x32x32xf32, #tpu.memory_space<vmem>>, vector<1x32x32xf32>
    %15 = vector.shape_cast %14 : vector<1x32x32xf32> to vector<32x32xf32>
    %cst_16 = arith.constant dense<0.000000e+00> : vector<8x32xf32>
    %16 = tpu.matmul %1, %15, %cst_16 {dimension_numbers = #tpu.dot_dimension_numbers<[1], [0], [0], [1], [0, 0, 1, 1], [], []>} : vector<8x32xf32>, vector<32x32xf32>, vector<8x32xf32> -> vector<8x32xf32>
    %c0_17 = arith.constant 0 : index
    %c0_18 = arith.constant 0 : index
    %17 = vector.load %arg4[%c0_17, %c0_18] : memref<8x32xf32, #tpu.memory_space<vmem>>, vector<8x32xf32>
    %c0_19 = arith.constant 0 : index
    %c0_20 = arith.constant 0 : index
    %18 = vector.load %arg5[%c0_19, %c0_20] : memref<8x32xf32, #tpu.memory_space<vmem>>, vector<8x32xf32>
    %19 = arith.mulf %4, %17 : vector<8x32xf32>
    %20 = arith.mulf %7, %18 : vector<8x32xf32>
    %21 = arith.addf %19, %20 : vector<8x32xf32>
    %c0_21 = arith.constant 0 : index
    %c0_22 = arith.constant 0 : index
    %c0_23 = arith.constant 0 : index
    %22 = vector.load %arg6[%c0_21, %c0_22, %c0_23] : memref<1x8x32xf32, #tpu.memory_space<vmem>>, vector<1x8x32xf32>
    %23 = vector.shape_cast %22 : vector<1x8x32xf32> to vector<8x32xf32>
    %24 = vector.shape_cast %21 : vector<8x32xf32> to vector<1x8x32xf32>
    tpu.vector_store %arg6[%c0_21, %c0_22, %c0_23], %24 {strides = array<i32>} : memref<1x8x32xf32, #tpu.memory_space<vmem>>, vector<1x8x32xf32>,
    %25 = arith.mulf %10, %17 : vector<8x32xf32>
    %26 = arith.mulf %13, %18 : vector<8x32xf32>
    %27 = arith.addf %25, %26 : vector<8x32xf32>
    %c0_24 = arith.constant 0 : index
    %c0_25 = arith.constant 0 : index
    %c0_26 = arith.constant 0 : index
    %28 = vector.load %arg7[%c0_24, %c0_25, %c0_26] : memref<1x8x32xf32, #tpu.memory_space<vmem>>, vector<1x8x32xf32>
    %29 = vector.shape_cast %28 : vector<1x8x32xf32> to vector<8x32xf32>
    %30 = vector.shape_cast %27 : vector<8x32xf32> to vector<1x8x32xf32>
    tpu.vector_store %arg7[%c0_24, %c0_25, %c0_26], %30 {strides = array<i32>} : memref<1x8x32xf32, #tpu.memory_space<vmem>>, vector<1x8x32xf32>,
    %c0_27 = arith.constant 0 : index
    %c0_28 = arith.constant 0 : index
    %c0_29 = arith.constant 0 : index
    %31 = vector.load %arg8[%c0_27, %c0_28, %c0_29] : memref<1x8x32xf32, #tpu.memory_space<vmem>>, vector<1x8x32xf32>
    %32 = vector.shape_cast %31 : vector<1x8x32xf32> to vector<8x32xf32>
    %33 = vector.shape_cast %16 : vector<8x32xf32> to vector<1x8x32xf32>
    tpu.vector_store %arg8[%c0_27, %c0_28, %c0_29], %33 {strides = array<i32>} : memref<1x8x32xf32, #tpu.memory_space<vmem>>, vector<1x8x32xf32>,
    return
  }
  func.func @transform_0(%arg0: i32, %arg1: i32) -> (i32, i32, i32) {
    %c0_i32 = arith.constant 0 : i32
    %c0_i32_0 = arith.constant 0 : i32
    return %arg0, %arg1, %c0_i32 : i32, i32, i32
  }
  func.func @transform_1(%arg0: i32, %arg1: i32) -> (i32, i32, i32) {
    %c0_i32 = arith.constant 0 : i32
    %c0_i32_0 = arith.constant 0 : i32
    %c0_i32_1 = arith.constant 0 : i32
    %c0_i32_2 = arith.constant 0 : i32
    return %c0_i32, %c0_i32_0, %c0_i32_1 : i32, i32, i32
  }
  func.func @transform_2(%arg0: i32, %arg1: i32) -> (i32, i32) {
    %c0_i32 = arith.constant 0 : i32
    %c0_i32_0 = arith.constant 0 : i32
    return %arg1, %c0_i32 : i32, i32
  }
  func.func @transform_3(%arg0: i32, %arg1: i32) -> (i32, i32) {
    %c0_i32 = arith.constant 0 : i32
    %c0_i32_0 = arith.constant 0 : i32
    return %arg1, %c0_i32 : i32, i32
  }
  func.func @transform_4(%arg0: i32, %arg1: i32) -> (i32, i32, i32) {
    %c0_i32 = arith.constant 0 : i32
    %c0_i32_0 = arith.constant 0 : i32
    return %arg0, %arg1, %c0_i32 : i32, i32, i32
  }
  func.func @transform_5(%arg0: i32, %arg1: i32) -> (i32, i32, i32) {
    %c0_i32 = arith.constant 0 : i32
    %c0_i32_0 = arith.constant 0 : i32
    return %arg0, %arg1, %c0_i32 : i32, i32, i32
  }
  func.func @transform_6(%arg0: i32, %arg1: i32) -> (i32, i32, i32) {
    %c0_i32 = arith.constant 0 : i32
    %c0_i32_0 = arith.constant 0 : i32
    return %arg0, %arg1, %c0_i32 : i32, i32, i32
  }
}

</mosaic_0001>

<bundles_post_ra>
// kernel: tpu_custom_call.1
= control target key start
LH: loop header
LB: loop body
LE: loop exit
PB: predicated region body
PF: predicated region fallthrough
CT: control target
= control target key end

     0   :  { %s1794_s0 = inlined_call_operand.hbm [shape: f32[2,8,32], index: 0, kind: input, shape index: {}]   ;;  %s1795_s1 = inlined_call_operand.hbm [shape: f32[5,32,32], index: 1, kind: input, shape index: {}]   ;;  %s1796_s2 = inlined_call_operand.hbm [shape: f32[8,32], index: 2, kind: input, shape index: {}]   ;;  %s1797_s3 = inlined_call_operand.hbm [shape: f32[8,32], index: 3, kind: input, shape index: {}]   ;;  %s1798_s4 = inlined_call_operand.hbm [shape: f32[2,8,32], index: 4, kind: output, shape index: {0}]   ;;  %s1799_s5 = inlined_call_operand.hbm [shape: f32[2,8,32], index: 5, kind: output, shape index: {1}]   ;;  %s1800_s6 = inlined_call_operand.hbm [shape: f32[2,8,32], index: 6, kind: output, shape index: {2}]  }
   0x1   :  { %1804 = sst [smem:[#allocation19_spill]] %s1795_s1 }
   0x2   :  { %1805 = sst [smem:[#allocation20_spill]] %s1796_s2 }
   0x3   :  { %12 = vsyncpa [#allocation3], 0 }
   0x4   :  { %14 = vsyncpa [#allocation3 + $0x1], 0 }
   0x5   :  { %15 = vsyncpa [#allocation6], 0 }
   0x6   :  { %16 = vsyncpa [#allocation9], 0 }
   0x7   :  { %17 = vsyncpa [#allocation4], 0 }
   0x8   :  { %19 = vsyncpa [#allocation4 + $0x1], 0 }
   0x9   :  { %20 = vsyncpa [#allocation12], 0 }
   0xa   :  { %22 = vsyncpa [#allocation12 + $0x1], 0  ;;  %s1494_s21 = smov 0   ;;  %s1496_s22 = smov 0  }
   0xb   :  { %s1498_s23 = smov 0   ;;  %s1500_s24 = smov 0  }
   0xc   :  { %s1502_s25 = smov 0   ;;  %s1504_s26 = smov 0  }
   0xd LB: > { %s1525_s27 = sadd.s32 4294967295, %s1446_s26   ;;  %s1803_s28 = sadd.s32 4294967294, %s1446_s26   ;;  %s1446_s26 = sphi %s1504_s26, %s28_s26   ;;  %s1442_s25 = sphi %s1502_s25, %s1827_s25   ;;  %s1438_s24 = sphi %s1500_s24, %s1826_s24   ;;  %s1434_s23 = sphi %s1498_s23, %s1825_s23   ;;  %s1430_s22 = sphi %s1496_s22, %s1824_s22   ;;  %s1426_s21 = sphi %s1494_s21, %s1823_s21  }
   0xe   : > { %p62_p0 = scmp.ne.s32.totalorder %s1430_s22, %s1426_s21  ;;  %p1801_p1 = scmp.eq.s32.totalorder %s1525_s27, 0 }
   0xf   : > { %p167_p3 = scmp.eq.s32.totalorder %s1803_s28, 1  ;;  %p981_p5 = scmp.ge.s32.totalorder %s1446_s26, 1 }
  0x10   : > { %p1536_p4 = por %p1801_p1, %p62_p0  ;;  %p230_p7 = scmp.lt.s32.totalorder %s1446_s26, 3 }
  0x11   : > { %p1541_p6 = por %p167_p3, %p62_p0  ;;  %s1448_s8 = smov [#allocation5]  }
  0x12   : > { %s1806_s29 = scalar_select %p1536_p4, 1, 0 }
  0x13   : > { %s1807_s30 = scalar_select %p1541_p6, 1, 0 }
  0x14   : > { %p1546_p8 = pnand %p981_p5, %p230_p7  ;;  %s242_s9 = sshll.u32 %s1448_s8, 4  ;;  %s243_s9 = int_to_ptr.vmem [resolvable:$true] %s242_s9 }
  0x15   : > { %s1449_s11 = smov [#allocation7]   ;;  %s1450_s13 = smov [#allocation8]  }
  0x16   : > { %p1109_p9 = pneg %p1546_p8  ;;  %s258_s12 = sshll.u32 %s1449_s11, 4  ;;  %s259_s12 = int_to_ptr.vmem [resolvable:$true] %s258_s12 }
  0x17   : > { %s271_s14 = sshll.u32 %s1450_s13, 4  ;;  %s1207_s15 = scalar_lea.vmem %s243_s9, 2560  ;;  %s272_s14 = int_to_ptr.vmem [resolvable:$true] %s271_s14 }
  0x18   : > { %p1555_p11 = pnand %p1109_p9, %p1801_p1  ;;  %p1208_p13 = scmp.ne.s32.totalorder %s243_s9, %s1207_s15 }
  0x19   : > { %p1215_p5 = scmp.lt.s32.totalorder %s243_s9, %s243_s9  ;;  %p1216_p7 = scmp.lt.s32.totalorder %s1207_s15, %s1207_s15 }
  0x1a   : > { %p1198_p12 = pneg %p1555_p11 }
  0x1b   : > { %p1217_p9 = por %p1216_p7, %p1215_p5 }
  0x1c   : > { %p1210_p0 = pnand %p1208_p13, %p1198_p12 }
  0x1e   : > { %p1211_p3 = pneg %p1210_p0 }
  0x20   : > { %p1218_p10 = pnand %p1217_p9, %p1211_p3 }
  0x22   : > { %1221 = shalt.err (!%p1218_p10)
}
  0x23   : > { %s1451_s16 = smov 128   ;;  %s1452_s17 = smov 8  }
  0x24   : > { %s1810_s1 = sld [smem:[#allocation19_spill]]  ;;  %s1233_s20 = scalar_lea.vmem %s259_s12, 128 }
  0x25   : > { %p1234_p1 = scmp.ne.s32.totalorder %s259_s12, %s1233_s20  ;;  %p1241_p2 = scmp.lt.s32.totalorder %s259_s12, %s259_s12 }
  0x26   : > { %p1242_p6 = scmp.lt.s32.totalorder %s1233_s20, %s1233_s20 }
  0x27   : > { %p1236_p13 = pnand %p1234_p1, %p1198_p12 }
  0x28   : > { %p1243_p5 = por %p1242_p6, %p1241_p2 }
  0x29   : > { %p1237_p0 = pneg %p1236_p13 }
  0x2a   : > { %1112 = dma.hbm_to_vmem [thread:$0]  (!%p1555_p11), %s1810_s1, 2560, %s243_s9, [#allocation6], %s1451_s16, %s1451_s16, %s1452_s17  }
  0x2b   : > { %p1244_p3 = pnand %p1243_p5, %p1237_p0 }
  0x2d   : > { %1247 = shalt.err (!%p1244_p3)
}
  0x2e   : > { %s1811_s2 = sld [smem:[#allocation20_spill]]  ;;  %s1259_s9 = scalar_lea.vmem %s272_s14, 128 }
  0x2f   : > { %p1260_p10 = scmp.ne.s32.totalorder %s272_s14, %s1259_s9  ;;  %p1267_p9 = scmp.lt.s32.totalorder %s272_s14, %s272_s14 }
  0x30   : > { %p1268_p13 = scmp.lt.s32.totalorder %s1259_s9, %s1259_s9 }
  0x31   : > { %p1262_p7 = pnand %p1260_p10, %p1198_p12 }
  0x32   : > { %p1269_p4 = por %p1268_p13, %p1267_p9 }
  0x33   : > { %p1263_p1 = pneg %p1262_p7 }
  0x34   : > { %1115 = dma.hbm_to_vmem [thread:$0]  (!%p1555_p11), %s1811_s2, 128, %s259_s12, [#allocation6]  }
  0x35   : > { %p1270_p2 = pnand %p1269_p4, %p1263_p1 }
  0x37   : > { %1273 = shalt.err (!%p1270_p2)
}
  0x38   : > { %1118 = dma.hbm_to_vmem [thread:$0]  (!%p1555_p11), %s1797_s3, 128, %s272_s14, [#allocation9]  }
  0x39   : > { %s49_s12 = sadd.s32 1, %s1434_s23  ;;  %s40_s16 = sadd.s32 1, %s1442_s25 }
  0x3a   : > { %p56_p4 = scmp.ne.s32.totalorder %s1434_s23, %s1430_s22  ;;  %p42_p6 = scmp.ge.s32.totalorder %s40_s16, 2 }
  0x3b   : > { %p57_p12 = scmp.eq.s32.totalorder %s1446_s26, 0  ;;  %p1812_p0 = scmp.eq.s32.totalorder %s1525_s27, 1 }
  0x3c   : > { %p1136_p3 = scmp.lt.s32.totalorder %s1446_s26, 2  ;;  %s1829_s16 = smov (%p42_p6, %s40_s16), 0 }
  0x3d   : > { %p1592_p5 = por %p1812_p0, %p56_p4  ;;  %p58_p10 = por %p57_p12, %p56_p4 }
  0x3e   : > { %s282_s17 = sand.u32 1, %s1434_s23   ;;  %s44_s18 = ssub.s32 %s1442_s25, %s1829_s16 }
  0x3f   : > { %p47_p7 = scmp.eq.s32.totalorder %s44_s18, 0  ;;  %s986_s14 = sshll.u32 %s282_s17, 3 }
  0x40   : > { %s987_s19 = sshll.u32 %s1442_s25, 7  ;;  %s286_s13 = scalar_lea.vmem [#allocation2], %s986_s14 }
  0x41   : > { %s1604_s20 = scalar_select %p47_p7, %s1434_s23, %s49_s12  }
  0x42   : > { %s292_s9 = scalar_lea.hbm %s1794_s0, %s987_s19  ;;  %s294_s15 = sshll.u32 %s286_s13, 4  ;;  %s295_s15 = int_to_ptr.vmem [resolvable:$true] %s294_s15 }
  0x43   : > { %p1611_p11 = pnand %p1136_p3, %p58_p10  ;;  %s283_s1 = scalar_lea.sflag [#allocation3], %s282_s17 }
  0x44   : > { %s1287_s18 = scalar_lea.vmem %s295_s15, 128  ;;  %s1453_s12 = smov [#allocation2]  }
  0x45   : > { %p1276_p1 = pneg %p1611_p11  ;;  %p1288_p9 = scmp.ne.s32.totalorder %s295_s15, %s1287_s18 }
  0x46   : > { %s1292_s2 = sshll.u32 %s1453_s12, 4  ;;  %s1293_s2 = int_to_ptr.vmem [resolvable:$false] %s1292_s2 }
  0x47   : > { %p1290_p13 = pnand %p1288_p9, %p1276_p1  ;;  %s1294_s19 = scalar_lea.vmem %s1293_s2, 256 }
  0x48   : > { %p1295_p4 = scmp.lt.s32.totalorder %s295_s15, %s1293_s2  ;;  %p1296_p6 = scmp.lt.s32.totalorder %s1294_s19, %s1287_s18 }
  0x49   : > { %p1291_p2 = pneg %p1290_p13 }
  0x4a   : > { %p1297_p12 = por %p1296_p6, %p1295_p4 }
  0x4c   : > { %p1298_p0 = pnand %p1297_p12, %p1291_p2 }
  0x4e   : > { %1301 = shalt.err (!%p1298_p0)
}
  0x4f   : > { %1122 = dma.hbm_to_vmem [thread:$0]  (!%p1611_p11), %s292_s9, 128, %s295_s15, %s283_s1  }
  0x50   : > { %303 = sbr.rel (%p1546_p8) target bundleno = 360 (0x168), region = 36  ;;  %s1622_s17 = sand.u32 (!%p1546_p8), 1, %s1430_s22  }
  0x51   : > { %s1625_s14 = sshll.u32 (!%p1546_p8), %s1622_s17, 3  ;;  %s306_s2 = scalar_lea.sflag (!%p1546_p8), [#allocation3], %s1622_s17 }
  0x52   : > { %s309_s8 = scalar_lea.vmem (!%p1546_p8), [#allocation2], %s1625_s14  ;;  %p1815_p3 = scmp.ne.s32.totalorder (!%p1546_p8), %s1806_s29, 0 }
  0x55   : > { %1405 = dma.done.wait (%p1815_p3), %s306_s2, 128  }
  0x56   : > { %1407 = vsyncadd (%p1815_p3), %s306_s2, 4294967168  ;;  %p1816_p10 = scmp.eq.s32.totalorder %s1525_s27, 0 }
  0x58   : > { %1409 = dma.done.wait (%p1816_p10), [#allocation6], 2688   ;;  %p1817_p8 = pmov %p1816_p10 }
  0x5a   : > { %1411 = vsyncadd (%p1817_p8), [#allocation6], 4294964608  ;;  %p1818_p7 = pmov %p1817_p8 }
  0x5c   : > { %1413 = dma.done.wait (%p1818_p7), [#allocation9], 128   ;;  %p1819_p11 = pmov %p1818_p7 }
  0x5d   : > { %v1454_v0 = vmov 0.0   ;;  %vm1455_vm0 = vmmov 0   ;;  %v364_v1 = vld [vmem:[#allocation5 + $0x18] sm:$0xff]  ;;  %v363_v3 = vld [vmem:[#allocation5 + $0x10] sm:$0xff]  ;;  %v362_v5 = vld [vmem:[#allocation5 + $0x8] sm:$0xff]  ;;  %vm365_vm1 = vcmask 261120  }
  0x5e   : > { %1415 = vsyncadd (%p1819_p11), [#allocation9], 4294967168  ;;  %1034 = vmatprep.subr.mxu0 %v1454_v0  ;;  %1045 = vmatprep.subr.mxu1 %v1454_v0  ;;  %v443_v2 = vld [vmem:[#allocation5 + $0x38] sm:$0xff]  ;;  %v442_v4 = vld [vmem:[#allocation5 + $0x30] sm:$0xff]  ;;  %s1679_s1 = sshll.u32 %s1438_s24, 7  ;;  %s345_s28 = scalar_lea.vmem [#allocation10], %s1625_s14 }
  0x5f   : > { %1042 = vmatprep.mubr.msk.f32.mxu0 %vm1455_vm0, %v1454_v0  ;;  %1053 = vmatprep.mubr.msk.f32.mxu1 %vm1455_vm0, %v1454_v0  ;;  %v441_v6 = vld [vmem:[#allocation5 + $0x28] sm:$0xff]  ;;  %v361_v7 = vld [vmem:[#allocation5] sm:$0xff]  ;;  %v360_v9 = vld [vmem:[%s309_s8] sm:$0xff]  ;;  %s775_s29 = sshll.u32 %s345_s28, 4  ;;  %s773_s9 = scalar_lea.hbm %s1798_s4, %s1679_s1  ;;  %s776_s29 = int_to_ptr.vmem [resolvable:$true] %s775_s29 }
  0x60   : > { %1035 = vmatpush3.msra.mxu0 %v364_v1  ;;  %1046 = vmatpush3.msra.mxu1 %v443_v2  ;;  %v440_v8 = vld [vmem:[#allocation5 + $0x20] sm:$0xff]  ;;  %v518_v10 = vld [vmem:[#allocation5 + $0x58] sm:$0xff]  ;;  %v517_v12 = vld [vmem:[#allocation5 + $0x50] sm:$0xff]  ;;  %s751_s13 = scalar_lea.sflag [#allocation4], %s1622_s17  ;;  %s1302_s15 = scalar_lea.vmem %s776_s29, 128 }
  0x61   : > { %1036 = vmatprep.subr.mxu0 %v1454_v0  ;;  %1047 = vmatprep.subr.mxu1 %v1454_v0  ;;  %v593_v11 = vld [vmem:[#allocation5 + $0x78] sm:$0xff]  ;;  %v592_v13 = vld [vmem:[#allocation5 + $0x70] sm:$0xff]  ;;  %v516_v14 = vld [vmem:[#allocation5 + $0x48] sm:$0xff]  ;;  %p1303_p1 = scmp.ne.s32.totalorder %s776_s29, %s1302_s15  ;;  %s1456_s24 = smov [#allocation10]  }
  0x62   : > { %1037 = vmatpush3.msra.mxu0 %v363_v3  ;;  %1048 = vmatpush3.msra.mxu1 %v442_v4  ;;  %v591_v15 = vld [vmem:[#allocation5 + $0x68] sm:$0xff]  ;;  %v515_v16 = vld [vmem:[#allocation5 + $0x40] sm:$0xff]  ;;  %v668_v18 = vld [vmem:[#allocation5 + $0x98] sm:$0xff]  ;;  %s1306_s18 = sshll.u32 %s1456_s24, 4  ;;  %s1307_s18 = int_to_ptr.vmem [resolvable:$false] %s1306_s18 }
  0x63   : > { %1038 = vmatprep.subr.mxu0 %v1454_v0  ;;  %1049 = vmatprep.subr.mxu1 %v1454_v0  ;;  %v590_v17 = vld [vmem:[#allocation5 + $0x60] sm:$0xff]  ;;  %v667_v19 = vld [vmem:[#allocation5 + $0x90] sm:$0xff]  ;;  %v666_v20 = vld [vmem:[#allocation5 + $0x88] sm:$0xff]  ;;  %p1304_p9 = pnand %p1303_p1, %p1592_p5  ;;  %s1308_s12 = scalar_lea.vmem %s1307_s18, 256 }
  0x64   : > { %1039 = vmatpush3.msra.mxu0 %v362_v5  ;;  %1050 = vmatpush3.msra.mxu1 %v441_v6  ;;  %v665_v21 = vld [vmem:[#allocation5 + $0x80] sm:$0xff]  ;;  %v740_v23 = vld [vmem:[#allocation8] sm:$0xff]  ;;  %p1309_p2 = scmp.lt.s32.totalorder %s776_s29, %s1307_s18  ;;  %p1310_p4 = scmp.lt.s32.totalorder %s1308_s12, %s1302_s15 }
  0x65   : > { %1040 = vmatprep.subr.mxu0 %v1454_v0  ;;  %1051 = vmatprep.subr.mxu1 %v1454_v0  ;;  %v739_v22 = vld [vmem:[#allocation7] sm:$0xff]  ;;  %p1305_p13 = pneg %p1304_p9 }
  0x66   : > { %1041 = vmatpush3.msra.mxu0 %v361_v7  ;;  %1052 = vmatpush3.msra.mxu1 %v440_v8  ;;  %p1311_p6 = por %p1310_p4, %p1309_p2 }
  0x67   : > { %1043 = vmatmul.mubr.msk.f32.vlgmr.msra.gmra.mxu0 %vm365_vm1, %v360_v9  ;;  %1056 = vmatprep.subr.mxu0 %v1454_v0 }
  0x68   : > { %1054 = vmatmul.mubr.msk.f32.vlgmr.msra.gmra.mxu1 %vm365_vm1, %v360_v9  ;;  %1057 = vmatpush3.msra.mxu0 %v518_v10  ;;  %p1312_p12 = pnand %p1311_p6, %p1305_p13 }
  0x69   : > { %1067 = vmatprep.subr.mxu1 %v1454_v0  ;;  %1058 = vmatprep.subr.mxu0 %v1454_v0 }
  0x6a   : > { %1068 = vmatpush3.msra.mxu1 %v593_v11  ;;  %1059 = vmatpush3.msra.mxu0 %v517_v12 }
  0x6b   : > { %1069 = vmatprep.subr.mxu1 %v1454_v0  ;;  %1060 = vmatprep.subr.mxu0 %v1454_v0 }
  0x6c   : > { %1070 = vmatpush3.msra.mxu1 %v592_v13  ;;  %1061 = vmatpush3.msra.mxu0 %v516_v14 }
  0x6d   : > { %1071 = vmatprep.subr.mxu1 %v1454_v0  ;;  %1062 = vmatprep.subr.mxu0 %v1454_v0 }
  0x6e   : > { %1072 = vmatpush3.msra.mxu1 %v591_v15  ;;  %1063 = vmatpush3.msra.mxu0 %v515_v16 }
  0x6f   : > { %1064 = vmatprep.mubr.msk.f32.mxu0 %vm1455_vm0, %v1454_v0  ;;  %1073 = vmatprep.subr.mxu1 %v1454_v0 }
  0x70   : > { %1065 = vmatmul.mubr.msk.f32.vlgmr.msra.gmra.mxu0 %vm365_vm1, %v360_v9  ;;  %1074 = vmatpush3.msra.mxu1 %v590_v17 }
  0x71   : > { %1075 = vmatprep.mubr.msk.f32.mxu1 %vm1455_vm0, %v1454_v0  ;;  %1078 = vmatprep.subr.mxu0 %v1454_v0 }
  0x72   : > { %1076 = vmatmul.mubr.msk.f32.vlgmr.msra.gmra.mxu1 %vm365_vm1, %v360_v9  ;;  %1079 = vmatpush3.msra.mxu0 %v668_v18 }
  0x73   : > { %1080 = vmatprep.subr.mxu0 %v1454_v0  ;;  %1086 = vmatprep.mubr.msk.f32.mxu0 %vm1455_vm0, %v1454_v0 }
  0x74   : > { %1081 = vmatpush3.msra.mxu0 %v667_v19 }
  0x75   : > { %1082 = vmatprep.subr.mxu0 %v1454_v0 }
  0x76   : > { %1083 = vmatpush3.msra.mxu0 %v666_v20 }
  0x77   : > { %1084 = vmatprep.subr.mxu0 %v1454_v0 }
  0x78   : > { %1085 = vmatpush3.msra.mxu0 %v665_v21 }
  0x79   : > { %1087 = vmatmul.mubr.msk.f32.vlgmr.msra.gmra.mxu0 %vm365_vm1, %v360_v9 }
 0x127   : > { %v435_v24 = vpop.f32.mrf.mxu0 }
 0x128   : > { %v741_v25 = vmul.f32 %v739_v22, %v435_v24  ;;  %v510_v26 = vpop.f32.mrf.mxu1 }
 0x129   : > { %v742_v27 = vmul.f32 %v740_v23, %v510_v26  ;;  %v1044_v28 = vpop.f32.mrf.mxu0 }
 0x12a   : > { %v1055_v29 = vpop.f32.mrf.mxu1 }
 0x12b   : > { %v743_v30 = vadd.f32 %v742_v27, %v741_v25 }
 0x12d   : > { %744 = vst.msk [vmem:[%s345_s28] sm:$0xff] %vm365_vm1, %v743_v30 }
 0x12e   : > { %1315 = shalt.err (!%p1312_p12)
}
 0x12f   : > { %s1316_s19 = scalar_lea.hbm %s773_s9, 128  ;;  %s1320_s8 = scalar_lea.hbm %s1798_s4, 256 }
 0x130   : > { %p1317_p0 = scmp.ne.s32.totalorder %s773_s9, %s1316_s19  ;;  %p1321_p8 = scmp.lt.s32.totalorder %s773_s9, %s1798_s4 }
 0x131   : > { %p1322_p7 = scmp.lt.s32.totalorder %s1320_s8, %s1316_s19 }
 0x132   : > { %p1318_p3 = pnand %p1317_p0, %p1592_p5 }
 0x133   : > { %p1323_p11 = por %p1322_p7, %p1321_p8 }
 0x134   : > { %p1319_p10 = pneg %p1318_p3 }
 0x136   : > { %p1324_p1 = pnand %p1323_p11, %p1319_p10 }
 0x138   : > { %1327 = shalt.err (!%p1324_p1)
}
 0x139   : > { %1103 = dma.vmem_to_hbm [thread:$0]  (%p1592_p5), %s776_s29, 128, %s773_s9, %s751_s13   ;;  %v585_v31 = vpop.f32.mrf.mxu0  ;;  %v660_v33 = vpop.f32.mrf.mxu1 }
 0x13a   : > { %v745_v32 = vmul.f32 %v739_v22, %v585_v31  ;;  %s755_s11 = sand.u32 1, %s1525_s27   ;;  %s352_s15 = scalar_lea.vmem [#allocation11], %s1625_s14  ;;  %v746_v35 = vmul.f32 %v740_v23, %v660_v33 }
 0x13b   : > { %v1066_v34 = vpop.f32.mrf.mxu0  ;;  %s789_s24 = sshll.u32 %s352_s15, 4  ;;  %v1077_v36 = vpop.f32.mrf.mxu1  ;;  %s359_s18 = scalar_lea.vmem [#allocation13], %s1625_s14  ;;  %s1711_s24 = int_to_ptr.vmem [resolvable:$true] %s789_s24 }
 0x13c   : > { %s803_s12 = sshll.u32 %s359_s18, 4  ;;  %v747_v37 = vadd.f32 %v746_v35, %v745_v32  ;;  %s1709_s2 = scalar_lea.hbm %s1799_s5, %s1679_s1  ;;  %s1720_s12 = int_to_ptr.vmem [resolvable:$true] %s803_s12 }
 0x13d   : > { %s1718_s9 = scalar_lea.hbm %s1800_s6, %s1679_s1  ;;  %s1722_s13 = scalar_lea.sflag [#allocation12], %s755_s11 }
 0x13e   : > { %748 = vst.msk [vmem:[%s352_s15] sm:$0xff] %vm365_vm1, %v747_v37  ;;  %s1328_s8 = scalar_lea.vmem %s1711_s24, 128  ;;  %s1457_s28 = smov [#allocation11]  }
 0x13f   : > { %p1329_p9 = scmp.ne.s32.totalorder %s1711_s24, %s1328_s8  ;;  %s1332_s7 = sshll.u32 %s1457_s28, 4  ;;  %s1333_s7 = int_to_ptr.vmem [resolvable:$false] %s1332_s7 }
 0x140   : > { %s1334_s19 = scalar_lea.vmem %s1333_s7, 256  ;;  %p1335_p4 = scmp.lt.s32.totalorder %s1711_s24, %s1333_s7 }
 0x141   : > { %p1330_p13 = pnand %p1329_p9, %p1592_p5  ;;  %p1336_p6 = scmp.lt.s32.totalorder %s1334_s19, %s1328_s8 }
 0x143   : > { %p1331_p2 = pneg %p1330_p13  ;;  %p1337_p12 = por %p1336_p6, %p1335_p4 }
 0x145   : > { %p1338_p0 = pnand %p1337_p12, %p1331_p2 }
 0x147   : > { %1341 = shalt.err (!%p1338_p0)
}
 0x148   : > { %s1342_s1 = scalar_lea.hbm %s1709_s2, 128  ;;  %s1346_s17 = scalar_lea.hbm %s1799_s5, 256 }
 0x149   : > { %p1343_p3 = scmp.ne.s32.totalorder %s1709_s2, %s1342_s1  ;;  %p1347_p7 = scmp.lt.s32.totalorder %s1709_s2, %s1799_s5 }
 0x14a   : > { %p1348_p11 = scmp.lt.s32.totalorder %s1346_s17, %s1342_s1 }
 0x14b   : > { %p1344_p10 = pnand %p1343_p3, %p1592_p5 }
 0x14c   : > { %p1349_p1 = por %p1348_p11, %p1347_p7 }
 0x14d   : > { %p1345_p8 = pneg %p1344_p10 }
 0x14f   : > { %p1350_p9 = pnand %p1349_p1, %p1345_p8 }
 0x151   : > { %1353 = shalt.err (!%p1350_p9)
}
 0x152   : > { %1104 = dma.vmem_to_hbm [thread:$0]  (%p1592_p5), %s1711_s24, 128, %s1709_s2, %s1722_s13   ;;  %v735_v38 = vpop.f32.mrf.mxu0 }
 0x153   : > { %749 = vst.msk [vmem:[%s359_s18] sm:$0xff] %vm365_vm1, %v735_v38  ;;  %s1354_s8 = scalar_lea.vmem %s1720_s12, 128  ;;  %s1458_s28 = smov [#allocation13]  }
 0x154   : > { %v1088_v39 = vpop.f32.mrf.mxu0  ;;  %p1355_p13 = scmp.ne.s32.totalorder %s1720_s12, %s1354_s8  ;;  %s1358_s7 = sshll.u32 %s1458_s28, 4  ;;  %s1359_s7 = int_to_ptr.vmem [resolvable:$false] %s1358_s7 }
 0x155   : > { %s1360_s19 = scalar_lea.vmem %s1359_s7, 256  ;;  %p1361_p6 = scmp.lt.s32.totalorder %s1720_s12, %s1359_s7 }
 0x156   : > { %p1356_p2 = pnand %p1355_p13, %p1592_p5  ;;  %p1362_p12 = scmp.lt.s32.totalorder %s1360_s19, %s1354_s8 }
 0x158   : > { %p1357_p4 = pneg %p1356_p2  ;;  %p1363_p0 = por %p1362_p12, %p1361_p6 }
 0x15a   : > { %p1364_p3 = pnand %p1363_p0, %p1357_p4 }
 0x15c   : > { %1367 = shalt.err (!%p1364_p3)
}
 0x15d   : > { %s1368_s14 = scalar_lea.hbm %s1718_s9, 128  ;;  %s1372_s2 = scalar_lea.hbm %s1800_s6, 256 }
 0x15e   : > { %p1369_p10 = scmp.ne.s32.totalorder %s1718_s9, %s1368_s14  ;;  %p1373_p11 = scmp.lt.s32.totalorder %s1718_s9, %s1800_s6 }
 0x15f   : > { %p1374_p1 = scmp.lt.s32.totalorder %s1372_s2, %s1368_s14 }
 0x160   : > { %p1370_p8 = pnand %p1369_p10, %p1592_p5 }
 0x161   : > { %p1375_p9 = por %p1374_p1, %p1373_p11 }
 0x162   : > { %p1371_p7 = pneg %p1370_p8 }
 0x164   : > { %p1376_p13 = pnand %p1375_p9, %p1371_p7 }
 0x166   : > { %1379 = shalt.err (!%p1376_p13)
}
 0x167   : > { %1105 = dma.vmem_to_hbm [thread:$0]  (%p1592_p5), %s1720_s12, 128, %s1718_s9, %s1722_s13  }
 0x168 PF: > { %s815_s15 = sand.u32 1, %s1426_s21   ;;  %p1820_p2 = scmp.ne.s32.totalorder %s1807_s30, 0 }
 0x169   : > { %p1821_p4 = scmp.ge.s32.totalorder %s1446_s26, 2  ;;  %s816_s17 = scalar_lea.sflag [#allocation4], %s815_s15 }
 0x16b   : > { %p1124_p6 = pnand %p1821_p4, %p1820_p2 }
 0x16d   : > { %p1125_p12 = pneg %p1124_p6 }
 0x16f   : > { %1417 = dma.done.wait (%p1125_p12), %s816_s17, 128  }
 0x170   : > { %1419 = vsyncadd (%p1125_p12), %s816_s17, 4294967168  ;;  %s1822_s27 = sadd.s32 4294967294, %s1446_s26  }
 0x171   : > { %s824_s29 = sand.u32 1, %s1822_s27  }
 0x172   : > { %s825_s10 = scalar_lea.sflag [#allocation12], %s824_s29 }
 0x173   : > { %1421 = dma.done.wait (%p1125_p12), %s825_s10, 256  }
 0x174   : > { %1423 = vsyncadd (%p1125_p12), %s825_s10, 4294967040  ;;  %s28_s26 = sadd.s32 1, %s1446_s26   ;;  %s1823_s21 = smov %s1430_s22 }
 0x175   : > { %p25_p5 = scmp.ge.s32.totalorder %s28_s26, 4   ;;  %s1824_s22 = smov %s1434_s23 }
 0x176   : > { %s1825_s23 = smov %s1604_s20  ;;  %s1826_s24 = smov %s1442_s25 }
 0x177   : > { %s1827_s25 = smov %s1829_s16  ;;  %27 = sbr.rel (!%p25_p5) target bundleno = 13 (0xd), region = 131 }
 0x17c   :  { %839 = vsyncpa [#allocation3], 1 }
 0x17d   :  { %841 = vsyncpa [#allocation3 + $0x1], 1 }
 0x17e   :  { %842 = vsyncpa [#allocation6], 1 }
 0x17f   :  { %843 = vsyncpa [#allocation9], 1 }
 0x180   :  { %844 = vsyncpa [#allocation4], 1 }
 0x181   :  { %846 = vsyncpa [#allocation4 + $0x1], 1 }
 0x182   :  { %847 = vsyncpa [#allocation12], 1 }
 0x183   :  { %849 = vsyncpa [#allocation12 + $0x1], 1 }

</bundles_post_ra>
